<compile_context>
chip_gen: v5e
topology: v5e:2x2
jax: 0.10.0
libtpu: 0.0.40
codegen_flags: <defaults>
</compile_context>

<pallas_src>
import functools

import jax
import jax.numpy as jnp
import numpy as np
from jax.experimental import pallas as pl
from jax.experimental.pallas import tpu as pltpu


def _round_up(x, m):
    return ((x + m - 1) // m) * m


def _sublane(dtype):
    return {4: 8, 2: 16, 1: 32}.get(jnp.dtype(dtype).itemsize, 8)


def _vmem_budget_bytes():
    """Per-generation VMEM budget handed to vmem_limit_bytes: half the physical VMEM,
    capped at 48 MiB (safe on v5e/v6e with 128 MiB physical and on v7x with 64 MiB)."""
    try:
        phys = int(pltpu.get_tpu_info().vmem_capacity_bytes)
    except Exception:  # unknown target / interpret mode
        phys = 64 << 20
    return max(8 << 20, min(phys // 2, 48 << 20))


# --------------------------------------------------------------------------------------
# Sparse in-place time masking: one (batch, mask) row band per grid step.
# --------------------------------------------------------------------------------------
def _time_band_kernel(*refs, num_specs, band, seq_len, zero_fill):
    """refs = (pos, len[, fills],          # SMEM scalar prefetch
               spec_hbm_0..S-1,            # ANY(HBM) inputs  (aliased -> outputs, unused)
               out_hbm_0..S-1,             # ANY(HBM) outputs (same buffers as inputs)
               band_buf_0..S-1,            # VMEM (band, F) scratch, one per spec
               sems)                       # DMA semaphores, shape (S,)
    """
    n_pref = 2 if zero_fill else 3
    pos_ref, len_ref = refs[0], refs[1]
    fill_ref = None if zero_fill else refs[2]
    rest = refs[n_pref:]
    out_hbm = rest[num_specs:2 * num_specs]
    bufs = rest[2 * num_specs:3 * num_specs]
    sems = rest[3 * num_specs]

    b = pl.program_id(0)
    m = pl.program_id(1)
    idx = b * pl.num_programs(1) + m
    p = pos_ref[idx]
    l = len_ref[idx]
    # Band [start, start+band) always covers [p, p+l) ∩ [0, seq_len): p < seq_len and
    # band >= any drawn length (band = round_up(max_width, 8) clamped to seq_len).
    start = jnp.maximum(jnp.minimum(p, seq_len - band), 0)

    def band_slice(s):
        return out_hbm[s].at[b, pl.ds(start, band), :]

    # Kick off all band reads. The out buffer aliases the input, so it already holds x
    # everywhere; we only rewrite the touched band.
    for s in range(num_specs):
        pltpu.make_async_copy(band_slice(s), bufs[s], sems.at[s]).start()

    iota = start + jax.lax.broadcasted_iota(jnp.int32, (band, 1), 0)
    hit = (p <= iota) & (iota < p + l)                       # (band, 1), broadcast over F

    for s in range(num_specs):
        pltpu.make_async_copy(band_slice(s), bufs[s], sems.at[s]).wait()
        x = bufs[s][...]
        fill = jnp.zeros((), x.dtype) if zero_fill else fill_ref[s].astype(x.dtype)
        bufs[s][...] = jnp.where(hit, fill, x)
        pltpu.make_async_copy(bufs[s], band_slice(s), sems.at[s]).start()

    # Writes must land before the next (possibly overlapping) mask of the same batch
    # element starts its read on the next sequential grid step.
    for s in range(num_specs):
        pltpu.make_async_copy(bufs[s], band_slice(s), sems.at[s]).wait()


def _apply_time_mask_sparse(specs, pos_flat, len_flat, fills, *, num_mask, zero_fill,
                            max_width):
    B, T, F = specs[0].shape
    num_specs = len(specs)
    band = min(_round_up(max(1, max_width), 8), T)

    prefetch = (pos_flat, len_flat) if zero_fill else (pos_flat, len_flat, fills)
    n_pref = len(prefetch)
    kernel = functools.partial(_time_band_kernel, num_specs=num_specs, band=band,
                               seq_len=T, zero_fill=zero_fill)
    any_spec = pl.BlockSpec(memory_space=pl.ANY)

    # TODO(synk): for the zero-fill case, skip the band read entirely (write-only zero DMA
    # over [pos, pos+len)) once dynamic-length DMA slices are practical.
    out = pl.pallas_call(
        kernel,
        out_shape=[jax.ShapeDtypeStruct(s.shape, s.dtype) for s in specs],
        grid_spec=pltpu.PrefetchScalarGridSpec(
            num_scalar_prefetch=n_pref,
            grid=(B, num_mask),
            in_specs=[any_spec] * num_specs,
            out_specs=[any_spec] * num_specs,
            scratch_shapes=[pltpu.VMEM((band, F), s.dtype) for s in specs]
                           + [pltpu.SemaphoreType.DMA((num_specs,))],
        ),
        # Each spec input aliases its output (in-place masked_fill_); indices include the
        # scalar-prefetch operands.
        input_output_aliases={n_pref + s: s for s in range(num_specs)},
        compiler_params=pltpu.CompilerParams(
            dimension_semantics=("parallel", "arbitrary")),
    )(*prefetch, *specs)
    return list(out)


# --------------------------------------------------------------------------------------
# Dense in-place freq masking: tiled over (B, T), mask built 1-D along F.
# --------------------------------------------------------------------------------------
def _freq_mask_kernel(*refs, num_mask, num_specs, zero_fill):
    n_pref = 2 if zero_fill else 3
    pos_ref, len_ref = refs[0], refs[1]
    fill_ref = None if zero_fill else refs[2]
    io = refs[n_pref:]
    spec_refs = io[:num_specs]
    out_refs = io[num_specs:]

    b = pl.program_id(0)
    F = spec_refs[0].shape[2]
    iota = jax.lax.broadcasted_iota(jnp.int32, (1, F), 1)

    mask = None
    for m in range(num_mask):                      # num_mask is tiny & static -> unrolled
        p = pos_ref[b * num_mask + m]
        l = len_ref[b * num_mask + m]
        hit = (p <= iota) & (iota < p + l)
        mask = hit if mask is None else (mask | hit)

    for s in range(num_specs):
        x = spec_refs[s][0]                        # (t_tile, F)
        fill = jnp.zeros((), x.dtype) if zero_fill else fill_ref[s].astype(x.dtype)
        out_refs[s][0] = jnp.where(mask, fill, x)  # (1,F) mask broadcasts over rows


def _choose_t_tile(T, F, dtype, num_specs, B, budget):
    """Largest sublane-aligned T tile such that double-buffered in+out blocks for all specs
    stay well inside `budget` (cap 4 MiB/block); full-T block if it all fits."""
    sub = _sublane(dtype)
    itemsize = jnp.dtype(dtype).itemsize
    row_bytes = _round_up(F, 128) * itemsize        # lane-padded VMEM footprint per row
    usable = (budget * 3) // 4                      # headroom for pipeline/internal scratch
    per_block = min(4 << 20, max(row_bytes * sub, usable // (4 * num_specs)))
    rows = max(sub, (per_block // row_bytes) // sub * sub)
    if B == 1 and T > sub:
        # Keep >= 2 T-tiles so both v7x TensorCores get work even at batch 1.
        rows = min(rows, max(sub, _round_up(pl.cdiv(T, 2), sub)))
    if rows >= T:
        rows = T                                    # full-dim block is always layout-legal
    return rows


def _apply_freq_mask_dense(specs, pos_flat, len_flat, fills, *, num_mask, zero_fill):
    B, T, F = specs[0].shape
    num_specs = len(specs)
    budget = _vmem_budget_bytes()
    t_tile = _choose_t_tile(T, F, specs[0].dtype, num_specs, B, budget)
    grid = (B, pl.cdiv(T, t_tile))                  # partial tail block is clipped on store

    prefetch = (pos_flat, len_flat) if zero_fill else (pos_flat, len_flat, fills)
    n_pref = len(prefetch)
    kernel = functools.partial(_freq_mask_kernel, num_mask=num_mask,
                               num_specs=num_specs, zero_fill=zero_fill)
    block = pl.BlockSpec((1, t_tile, F), lambda b, t, *_: (b, t, 0))

    out = pl.pallas_call(
        kernel,
        out_shape=[jax.ShapeDtypeStruct((B, T, F), s.dtype) for s in specs],
        grid_spec=pltpu.PrefetchScalarGridSpec(
            num_scalar_prefetch=n_pref,
            grid=grid,
            in_specs=[block] * num_specs,
            out_specs=[block] * num_specs,
        ),
        input_output_aliases={n_pref + s: s for s in range(num_specs)},
        compiler_params=pltpu.CompilerParams(
            dimension_semantics=("parallel", "parallel"),
            vmem_limit_bytes=budget),
    )(*prefetch, *specs)
    return list(out)


# --------------------------------------------------------------------------------------
# Module
# --------------------------------------------------------------------------------------
class MaskAlongAxisFused:
    """JAX/Pallas port of espnet2.layers.mask_along_axis.MaskAlongAxisFused."""

    def __init__(self, mask_width_range=(0, 30), num_mask=2, dim="time",
                 replace_with_zero=True):
        if isinstance(mask_width_range, int):
            mask_width_range = (0, mask_width_range)
        if len(mask_width_range) != 2:
            raise TypeError(
                f"mask_width_range must be a tuple of int and int values: "
                f"{mask_width_range}")
        assert mask_width_range[1] > mask_width_range[0]
        if isinstance(dim, str):
            if dim == "time":
                dim = 1
            elif dim == "freq":
                dim = 2
            else:
                raise ValueError("dim must be int, 'time' or 'freq'")
        if dim not in (1, 2):
            raise ValueError("dim must be 1 (time) or 2 (freq) for 3-D specs")
        self.mask_width_range = mask_width_range
        self.num_mask = num_mask
        self.dim = dim
        self.replace_with_zero = replace_with_zero
        self.mask_axis = "time" if dim == 1 else "freq"
        # debugging helpers (used by the reference check in __main__)
        self._last_mask_pos = None
        self._last_mask_len = None

    def __call__(self, spec, spec_lengths=None, *, key):
        """spec: List[(B, L, F)] (or list of 4-D tensors), all the same shape."""
        if not isinstance(spec, (list, tuple)):
            spec = [spec]
        spec = list(spec)
        org_size = spec[0].shape
        if spec[0].ndim == 4:
            spec = [s.reshape(-1, s.shape[2], s.shape[3]) for s in spec]
        for s in spec:
            assert s.shape == spec[0].shape, "all spec tensors must share one shape"

        # Config no-ops: skip the HBM round trip entirely (free win).
        max_width = self.mask_width_range[1] - 1     # randint upper bound is exclusive
        if self.num_mask == 0 or max_width <= 0:
            self._last_mask_pos = None
            self._last_mask_len = None
            return [s.reshape(org_size) for s in spec], spec_lengths

        B = spec[0].shape[0]
        D = spec[0].shape[self.dim]

        k_len, k_pos = jax.random.split(key)
        mask_length = jax.random.randint(
            k_len, (B, self.num_mask),
            self.mask_width_range[0], self.mask_width_range[1], dtype=jnp.int32)
        # On-device clamp of the position upper bound (no host sync, jit-friendly).
        pos_high = jnp.maximum(jnp.int32(1), jnp.int32(D) - jnp.max(mask_length))
        mask_pos = jax.random.randint(
            k_pos, (B, self.num_mask), 0, pos_high, dtype=jnp.int32)

        self._last_mask_pos = mask_pos
        self._last_mask_len = mask_length

        if self.replace_with_zero:
            fills = None
        else:
            # Per-tensor mean fill (ESPnet semantics); accumulate in f32.
            # TODO(synk): if this path is hot, fuse the mean into an upstream op or a
            # block-wise partial-sum pass instead of a standalone full-HBM reduction.
            fills = jnp.stack(
                [jnp.mean(f.astype(jnp.float32)) for f in spec]).astype(jnp.float32)

        pos_flat = mask_pos.reshape(-1)
        len_flat = mask_length.reshape(-1)

        if self.dim == 1:
            masked = _apply_time_mask_sparse(
                spec, pos_flat, len_flat, fills, num_mask=self.num_mask,
                zero_fill=self.replace_with_zero, max_width=max_width)
        else:
            masked = _apply_freq_mask_dense(
                spec, pos_flat, len_flat, fills, num_mask=self.num_mask,
                zero_fill=self.replace_with_zero)

        return [m.reshape(org_size) for m in masked], spec_lengths


if __name__ == "__main__":
    key = jax.random.PRNGKey(0)
    k_d1, k_d2, k_m1, k_m2, k_m3 = jax.random.split(key, 5)

    B, T, F = 2, 16, 16
    spec1 = jax.random.normal(k_d1, (B, T, F), dtype=jnp.float32)
    spec2 = jax.random.normal(k_d2, (B, T, F), dtype=jnp.float32)

    def time_ref(inp, pos, length, fill):
        pos = np.asarray(pos)[:, :, None]
        length = np.asarray(length)[:, :, None]
        aran = np.arange(T)[None, None, :]
        mask = ((pos <= aran) & (aran < pos + length)).any(axis=1)[:, :, None]
        return np.where(mask, fill, np.asarray(inp))

    def freq_ref(inp, pos, length, fill):
        pos = np.asarray(pos)[:, :, None]
        length = np.asarray(length)[:, :, None]
        aran = np.arange(F)[None, None, :]
        mask = ((pos <= aran) & (aran < pos + length)).any(axis=1)[:, None, :]
        return np.where(mask, fill, np.asarray(inp))

    # --- time masking, zero fill (sparse in-place band kernel, both tensors fused) ---
    mod_t = MaskAlongAxisFused(mask_width_range=(0, 8), num_mask=2, dim="time",
                               replace_with_zero=True)
    out_t, _ = mod_t([spec1, spec2], spec_lengths=None, key=k_m1)
    jax.block_until_ready(out_t)
    for inp, got in zip([spec1, spec2], out_t):
        ref = time_ref(inp, mod_t._last_mask_pos, mod_t._last_mask_len, 0.0)
        np.testing.assert_allclose(np.asarray(got), ref, rtol=0, atol=0)

    # --- time masking, mean fill (exercises the fill-prefetch path of the band kernel) ---
    mod_tm = MaskAlongAxisFused(mask_width_range=(0, 8), num_mask=2, dim="time",
                                replace_with_zero=False)
    out_tm, _ = mod_tm([spec1, spec2], spec_lengths=None, key=k_m3)
    jax.block_until_ready(out_tm)
    for inp, got in zip([spec1, spec2], out_tm):
        fill = np.asarray(jnp.mean(inp.astype(jnp.float32)))
        ref = time_ref(inp, mod_tm._last_mask_pos, mod_tm._last_mask_len, fill)
        np.testing.assert_allclose(np.asarray(got), ref, rtol=0, atol=0)

    # --- freq masking, mean fill (dense in-place tiled kernel) ---
    mod_f = MaskAlongAxisFused(mask_width_range=(0, 5), num_mask=2, dim="freq",
                               replace_with_zero=False)
    out_f, _ = mod_f([spec1, spec2], spec_lengths=None, key=k_m2)
    jax.block_until_ready(out_f)
    for inp, got in zip([spec1, spec2], out_f):
        fill = np.asarray(jnp.mean(inp.astype(jnp.float32)))
        ref = freq_ref(inp, mod_f._last_mask_pos, mod_f._last_mask_len, fill)
        np.testing.assert_allclose(np.asarray(got), ref, rtol=0, atol=0)

    # --- num_mask == 0 short-circuit (no kernel launch) ---
    mod_0 = MaskAlongAxisFused(mask_width_range=(0, 8), num_mask=0, dim="time")
    out_0, _ = mod_0([spec1], spec_lengths=None, key=k_m1)
    np.testing.assert_allclose(np.asarray(out_0[0]), np.asarray(spec1), rtol=0, atol=0)

    print("KERNEL_OK")
</pallas_src>

<mosaic_0001>
module attributes {stable_mosaic.version = 11 : i64} {
  func.func @_time_band_kernel(%arg0: i32, %arg1: i32, %arg2: memref<4xi32, #tpu.memory_space<smem>>, %arg3: memref<4xi32, #tpu.memory_space<smem>>, %arg4: memref<2x16x16xf32, #tpu.memory_space<any>>, %arg5: memref<2x16x16xf32, #tpu.memory_space<any>>, %arg6: memref<2x16x16xf32, #tpu.memory_space<any>>, %arg7: memref<2x16x16xf32, #tpu.memory_space<any>>, %arg8: memref<8x16xf32, #tpu.memory_space<vmem>>, %arg9: memref<8x16xf32, #tpu.memory_space<vmem>>, %arg10: memref<2x!tpu.dma_semaphore, #tpu.memory_space<semaphore_mem>>) attributes {dimension_semantics = [#tpu.dimension_semantics<parallel>, #tpu.dimension_semantics<arbitrary>], iteration_bounds = array<i64: 2, 2>, scalar_prefetch = 2 : i64, scratch_operands = 3 : i64, tpu.core_type = #tpu.core_type<tc>, window_params = [{}, {}, {}, {}]} {
    %c2_i32 = arith.constant 2 : i32
    %0 = arith.muli %arg0, %c2_i32 : i32
    %1 = arith.addi %0, %arg1 : i32
    %2 = arith.index_cast %1 : i32 to index
    %3 = memref.load %arg2[%2] : memref<4xi32, #tpu.memory_space<smem>>
    %4 = arith.index_cast %1 : i32 to index
    %5 = memref.load %arg3[%4] : memref<4xi32, #tpu.memory_space<smem>>
    %c8_i32 = arith.constant 8 : i32
    %6 = arith.minsi %3, %c8_i32 : i32
    %c0_i32 = arith.constant 0 : i32
    %7 = arith.maxsi %6, %c0_i32 : i32
    %c0_i32_0 = arith.constant 0 : i32
    %c0_i32_1 = arith.constant 0 : i32
    %8 = tpu.memref_slice %arg6[%arg0, %7, %c0_i32_1] : memref<2x16x16xf32, #tpu.memory_space<any>> -> memref<1x8x16xf32, #tpu.memory_space<any>>
    %9 = tpu.memref_squeeze %8 : memref<1x8x16xf32, #tpu.memory_space<any>> -> memref<8x16xf32, #tpu.memory_space<any>>
    %10 = tpu.memref_slice %arg10[%c0_i32_0] : memref<2x!tpu.dma_semaphore, #tpu.memory_space<semaphore_mem>> -> memref<1x!tpu.dma_semaphore, #tpu.memory_space<semaphore_mem>>
    %11 = tpu.memref_squeeze %10 : memref<1x!tpu.dma_semaphore, #tpu.memory_space<semaphore_mem>> -> memref<!tpu.dma_semaphore, #tpu.memory_space<semaphore_mem>>
    tpu.enqueue_dma source(%9 : memref<8x16xf32, #tpu.memory_space<any>>) target(%arg8 : memref<8x16xf32, #tpu.memory_space<vmem>>) target_semaphore(%11 : memref<!tpu.dma_semaphore, #tpu.memory_space<semaphore_mem>>)
    %c1_i32 = arith.constant 1 : i32
    %c0_i32_2 = arith.constant 0 : i32
    %12 = tpu.memref_slice %arg7[%arg0, %7, %c0_i32_2] : memref<2x16x16xf32, #tpu.memory_space<any>> -> memref<1x8x16xf32, #tpu.memory_space<any>>
    %13 = tpu.memref_squeeze %12 : memref<1x8x16xf32, #tpu.memory_space<any>> -> memref<8x16xf32, #tpu.memory_space<any>>
    %14 = tpu.memref_slice %arg10[%c1_i32] : memref<2x!tpu.dma_semaphore, #tpu.memory_space<semaphore_mem>> -> memref<1x!tpu.dma_semaphore, #tpu.memory_space<semaphore_mem>>
    %15 = tpu.memref_squeeze %14 : memref<1x!tpu.dma_semaphore, #tpu.memory_space<semaphore_mem>> -> memref<!tpu.dma_semaphore, #tpu.memory_space<semaphore_mem>>
    tpu.enqueue_dma source(%13 : memref<8x16xf32, #tpu.memory_space<any>>) target(%arg9 : memref<8x16xf32, #tpu.memory_space<vmem>>) target_semaphore(%15 : memref<!tpu.dma_semaphore, #tpu.memory_space<semaphore_mem>>)
    %16 = tpu.iota {dimensions = array<i32: 0>} : vector<8x1xi32>
    %17 = vector.broadcast %7 : i32 to vector<8x1xi32>
    %18 = arith.addi %17, %16 : vector<8x1xi32>
    %19 = vector.broadcast %3 : i32 to vector<8x1xi32>
    %20 = arith.cmpi sle, %19, %18 : vector<8x1xi32>
    %21 = arith.addi %3, %5 : i32
    %22 = vector.broadcast %21 : i32 to vector<8x1xi32>
    %23 = arith.cmpi slt, %18, %22 : vector<8x1xi32>
    %24 = arith.andi %20, %23 : vector<8x1xi1>
    %c0_i32_3 = arith.constant 0 : i32
    %c0_i32_4 = arith.constant 0 : i32
    %25 = tpu.memref_slice %arg6[%arg0, %7, %c0_i32_4] : memref<2x16x16xf32, #tpu.memory_space<any>> -> memref<1x8x16xf32, #tpu.memory_space<any>>
    %26 = tpu.memref_squeeze %25 : memref<1x8x16xf32, #tpu.memory_space<any>> -> memref<8x16xf32, #tpu.memory_space<any>>
    %27 = tpu.memref_slice %arg10[%c0_i32_3] : memref<2x!tpu.dma_semaphore, #tpu.memory_space<semaphore_mem>> -> memref<1x!tpu.dma_semaphore, #tpu.memory_space<semaphore_mem>>
    %28 = tpu.memref_squeeze %27 : memref<1x!tpu.dma_semaphore, #tpu.memory_space<semaphore_mem>> -> memref<!tpu.dma_semaphore, #tpu.memory_space<semaphore_mem>>
    tpu.wait_dma2 semaphore(%28 : memref<!tpu.dma_semaphore, #tpu.memory_space<semaphore_mem>>) src(%26 : memref<8x16xf32, #tpu.memory_space<any>>) dst(%arg8 : memref<8x16xf32, #tpu.memory_space<vmem>>)
    %c0 = arith.constant 0 : index
    %c0_5 = arith.constant 0 : index
    %29 = vector.load %arg8[%c0, %c0_5] : memref<8x16xf32, #tpu.memory_space<vmem>>, vector<8x16xf32>
    %cst = arith.constant 0.000000e+00 : f32
    %30 = vector.shape_cast %24 : vector<8x1xi1> to vector<8x1xi1>
    %31 = vector.broadcast %30 : vector<8x1xi1> to vector<8x16xi1>
    %32 = vector.broadcast %cst : f32 to vector<8x16xf32>
    %33 = arith.select %31, %32, %29 : vector<8x16xi1>, vector<8x16xf32>
    %c0_6 = arith.constant 0 : index
    %c0_7 = arith.constant 0 : index
    %34 = vector.load %arg8[%c0_6, %c0_7] : memref<8x16xf32, #tpu.memory_space<vmem>>, vector<8x16xf32>
    tpu.vector_store %arg8[%c0_6, %c0_7], %33 {strides = array<i32>} : memref<8x16xf32, #tpu.memory_space<vmem>>, vector<8x16xf32>,
    %c0_i32_8 = arith.constant 0 : i32
    %c0_i32_9 = arith.constant 0 : i32
    %35 = tpu.memref_slice %arg6[%arg0, %7, %c0_i32_9] : memref<2x16x16xf32, #tpu.memory_space<any>> -> memref<1x8x16xf32, #tpu.memory_space<any>>
    %36 = tpu.memref_squeeze %35 : memref<1x8x16xf32, #tpu.memory_space<any>> -> memref<8x16xf32, #tpu.memory_space<any>>
    %37 = tpu.memref_slice %arg10[%c0_i32_8] : memref<2x!tpu.dma_semaphore, #tpu.memory_space<semaphore_mem>> -> memref<1x!tpu.dma_semaphore, #tpu.memory_space<semaphore_mem>>
    %38 = tpu.memref_squeeze %37 : memref<1x!tpu.dma_semaphore, #tpu.memory_space<semaphore_mem>> -> memref<!tpu.dma_semaphore, #tpu.memory_space<semaphore_mem>>
    tpu.enqueue_dma source(%arg8 : memref<8x16xf32, #tpu.memory_space<vmem>>) target(%36 : memref<8x16xf32, #tpu.memory_space<any>>) target_semaphore(%38 : memref<!tpu.dma_semaphore, #tpu.memory_space<semaphore_mem>>)
    %c1_i32_10 = arith.constant 1 : i32
    %c0_i32_11 = arith.constant 0 : i32
    %39 = tpu.memref_slice %arg7[%arg0, %7, %c0_i32_11] : memref<2x16x16xf32, #tpu.memory_space<any>> -> memref<1x8x16xf32, #tpu.memory_space<any>>
    %40 = tpu.memref_squeeze %39 : memref<1x8x16xf32, #tpu.memory_space<any>> -> memref<8x16xf32, #tpu.memory_space<any>>
    %41 = tpu.memref_slice %arg10[%c1_i32_10] : memref<2x!tpu.dma_semaphore, #tpu.memory_space<semaphore_mem>> -> memref<1x!tpu.dma_semaphore, #tpu.memory_space<semaphore_mem>>
    %42 = tpu.memref_squeeze %41 : memref<1x!tpu.dma_semaphore, #tpu.memory_space<semaphore_mem>> -> memref<!tpu.dma_semaphore, #tpu.memory_space<semaphore_mem>>
    tpu.wait_dma2 semaphore(%42 : memref<!tpu.dma_semaphore, #tpu.memory_space<semaphore_mem>>) src(%40 : memref<8x16xf32, #tpu.memory_space<any>>) dst(%arg9 : memref<8x16xf32, #tpu.memory_space<vmem>>)
    %c0_12 = arith.constant 0 : index
    %c0_13 = arith.constant 0 : index
    %43 = vector.load %arg9[%c0_12, %c0_13] : memref<8x16xf32, #tpu.memory_space<vmem>>, vector<8x16xf32>
    %cst_14 = arith.constant 0.000000e+00 : f32
    %44 = vector.shape_cast %24 : vector<8x1xi1> to vector<8x1xi1>
    %45 = vector.broadcast %44 : vector<8x1xi1> to vector<8x16xi1>
    %46 = vector.broadcast %cst_14 : f32 to vector<8x16xf32>
    %47 = arith.select %45, %46, %43 : vector<8x16xi1>, vector<8x16xf32>
    %c0_15 = arith.constant 0 : index
    %c0_16 = arith.constant 0 : index
    %48 = vector.load %arg9[%c0_15, %c0_16] : memref<8x16xf32, #tpu.memory_space<vmem>>, vector<8x16xf32>
    tpu.vector_store %arg9[%c0_15, %c0_16], %47 {strides = array<i32>} : memref<8x16xf32, #tpu.memory_space<vmem>>, vector<8x16xf32>,
    %c1_i32_17 = arith.constant 1 : i32
    %c0_i32_18 = arith.constant 0 : i32
    %49 = tpu.memref_slice %arg7[%arg0, %7, %c0_i32_18] : memref<2x16x16xf32, #tpu.memory_space<any>> -> memref<1x8x16xf32, #tpu.memory_space<any>>
    %50 = tpu.memref_squeeze %49 : memref<1x8x16xf32, #tpu.memory_space<any>> -> memref<8x16xf32, #tpu.memory_space<any>>
    %51 = tpu.memref_slice %arg10[%c1_i32_17] : memref<2x!tpu.dma_semaphore, #tpu.memory_space<semaphore_mem>> -> memref<1x!tpu.dma_semaphore, #tpu.memory_space<semaphore_mem>>
    %52 = tpu.memref_squeeze %51 : memref<1x!tpu.dma_semaphore, #tpu.memory_space<semaphore_mem>> -> memref<!tpu.dma_semaphore, #tpu.memory_space<semaphore_mem>>
    tpu.enqueue_dma source(%arg9 : memref<8x16xf32, #tpu.memory_space<vmem>>) target(%50 : memref<8x16xf32, #tpu.memory_space<any>>) target_semaphore(%52 : memref<!tpu.dma_semaphore, #tpu.memory_space<semaphore_mem>>)
    %c0_i32_19 = arith.constant 0 : i32
    %c0_i32_20 = arith.constant 0 : i32
    %53 = tpu.memref_slice %arg6[%arg0, %7, %c0_i32_20] : memref<2x16x16xf32, #tpu.memory_space<any>> -> memref<1x8x16xf32, #tpu.memory_space<any>>
    %54 = tpu.memref_squeeze %53 : memref<1x8x16xf32, #tpu.memory_space<any>> -> memref<8x16xf32, #tpu.memory_space<any>>
    %55 = tpu.memref_slice %arg10[%c0_i32_19] : memref<2x!tpu.dma_semaphore, #tpu.memory_space<semaphore_mem>> -> memref<1x!tpu.dma_semaphore, #tpu.memory_space<semaphore_mem>>
    %56 = tpu.memref_squeeze %55 : memref<1x!tpu.dma_semaphore, #tpu.memory_space<semaphore_mem>> -> memref<!tpu.dma_semaphore, #tpu.memory_space<semaphore_mem>>
    tpu.wait_dma2 semaphore(%56 : memref<!tpu.dma_semaphore, #tpu.memory_space<semaphore_mem>>) src(%arg8 : memref<8x16xf32, #tpu.memory_space<vmem>>) dst(%54 : memref<8x16xf32, #tpu.memory_space<any>>)
    %c1_i32_21 = arith.constant 1 : i32
    %c0_i32_22 = arith.constant 0 : i32
    %57 = tpu.memref_slice %arg7[%arg0, %7, %c0_i32_22] : memref<2x16x16xf32, #tpu.memory_space<any>> -> memref<1x8x16xf32, #tpu.memory_space<any>>
    %58 = tpu.memref_squeeze %57 : memref<1x8x16xf32, #tpu.memory_space<any>> -> memref<8x16xf32, #tpu.memory_space<any>>
    %59 = tpu.memref_slice %arg10[%c1_i32_21] : memref<2x!tpu.dma_semaphore, #tpu.memory_space<semaphore_mem>> -> memref<1x!tpu.dma_semaphore, #tpu.memory_space<semaphore_mem>>
    %60 = tpu.memref_squeeze %59 : memref<1x!tpu.dma_semaphore, #tpu.memory_space<semaphore_mem>> -> memref<!tpu.dma_semaphore, #tpu.memory_space<semaphore_mem>>
    tpu.wait_dma2 semaphore(%60 : memref<!tpu.dma_semaphore, #tpu.memory_space<semaphore_mem>>) src(%arg9 : memref<8x16xf32, #tpu.memory_space<vmem>>) dst(%58 : memref<8x16xf32, #tpu.memory_space<any>>)
    return
  }
}

</mosaic_0001>

<bundles_post_ra>
// kernel: tpu_custom_call.1
= control target key start
LH: loop header
LB: loop body
LE: loop exit
PB: predicated region body
PF: predicated region fallthrough
CT: control target
= control target key end

     0   :  { %s355_s3 = smov [#allocation6]   ;;  %s356_s23 = smov [#allocation7]   ;;  %s513_s0 = inlined_call_operand.vmem [shape: s32[4], index: 0, kind: input, shape index: {}]   ;;  %s514_s2 = inlined_call_operand.hbm [shape: f32[2,16,16], index: 2, kind: input, shape index: {}, may-alias: {2,4}]   ;;  %s515_s3 = inlined_call_operand.hbm [shape: f32[2,16,16], index: 3, kind: input, shape index: {}, may-alias: {3,5}]   ;;  %s516_s4 = inlined_call_operand.hbm [shape: f32[2,16,16], index: 4, kind: output, shape index: {0}, may-alias: {2,4}]   ;;  %s517_s5 = inlined_call_operand.hbm [shape: f32[2,16,16], index: 5, kind: output, shape index: {1}, may-alias: {3,5}]   ;;  %s518_s1 = inlined_call_operand.vmem [shape: s32[4], index: 1, kind: input, shape index: {}]  }
   0x1   :  { %s12_s20 = sshll.u32 %s513_s0, 4  ;;  %s17_s2 = sshll.u32 %s518_s1, 4  ;;  %s13_s20 = int_to_ptr.vmem [resolvable:$true] %s12_s20  ;;  %s18_s2 = int_to_ptr.vmem [resolvable:$true] %s17_s2 }
   0x2   :  { %15 = dma.vmem_to_smem %s13_s20, 16, %s355_s3, [#allocation5] }
   0x3   :  { %20 = dma.vmem_to_smem %s18_s2, 16, %s356_s23, [#allocation5] }
   0x4   :  { %333 = dma.done.wait [#allocation5], 32 }
   0x5   :  { %334 = vsyncadd [#allocation5], 4294967264 }
   0x6   :  { %23 = sfence }
   0x7   :  { %s395_s24 = smov 0   ;;  %s397_s25 = smov 0  }
   0x8   :  { %s399_s26 = smov 0  }
   0x9 LB: > { %s32_s0 = sadd.s32 1, %s345_s24  ;;  %s35_s1 = sadd.s32 1, %s349_s25  ;;  %v78_v0 = vlaneseq  ;;  %s353_s26 = sphi %s399_s26, %s29_s26   ;;  %s349_s25 = sphi %s397_s25, %s526_s25   ;;  %s345_s24 = sphi %s395_s24, %s525_s24  }
   0xa   : > { %p33_p0 = scmp.ge.s32.totalorder %s32_s0, 2  ;;  %s162_s27 = sshll.u32 %s349_s25, 1 }
   0xb   : > { %s40_s28 = sadd.s32 %s345_s24, %s162_s27  ;;  %s168_s6 = sshll.u32 %s349_s25, 4  ;;  %v79_v1 = vshrl.u32 %v78_v0, 7 }
   0xc   : > { %s528_s0 = smov (%p33_p0, %s32_s0), 0  ;;  %s530_s1 = smov (!%p33_p0, %s35_s1), %s349_s25 }
   0xd   : > { %s41_s29 = sld [smem:[#allocation6 + %s40_s28]]  ;;  %p37_p1 = scmp.ge.s32.totalorder %s530_s1, 2 }
   0xe   : > { %s42_s30 = sld [smem:[#allocation7 + %s40_s28]]  ;;  %s357_s7 = smov [#allocation2]  }
   0xf   : > { %s532_s1 = smov (%p37_p1, %s530_s1), 0  ;;  %s410_s8 = sshll.u32 %s357_s7, 4  ;;  %s60_s8 = int_to_ptr.vmem [resolvable:$true] %s410_s8 }
  0x10   : > { %s358_s11 = smov [#allocation3]   ;;  %s229_s25 = scalar_lea.hbm %s516_s4, 32 }
  0x11   : > { %s412_s12 = sshll.u32 %s358_s11, 4  ;;  %s75_s12 = int_to_ptr.vmem [resolvable:$true] %s412_s12 }
  0x13   : > { %p43_p2 = scmp.lt.s32.totalorder %s41_s29, 8  ;;  %p163_p3 = scmp.gt.s32.totalorder %s41_s29, 0  ;;  %v82_v3 = vstv %s41_s29 }
  0x14   : > { %s84_s10 = sadd.s32 %s42_s30, %s41_s29 }
  0x15   : > { %s44_s9 = scalar_select %p43_p2, %s41_s29, 8  ;;  %v85_v4 = vstv %s84_s10 }
  0x17   : > { %s534_s9 = smov (!%p163_p3, %s44_s9), 0 }
  0x18   : > { %s48_s13 = sadd.s32 %s534_s9, %s168_s6  ;;  %v80_v2 = vstv %s534_s9 }
  0x19   : > { %s49_s16 = scalar_lea.hbm %s516_s4, %s48_s13  ;;  %v81_v5 = vadd.s32 %v80_v2, %v79_v1  ;;  %s63_s19 = scalar_lea.hbm %s517_s5, %s48_s13 }
  0x1a   : > { %s57_s20 = sshll.u32 %s49_s16, 4  ;;  %s72_s21 = sshll.u32 %s63_s19, 4  ;;  %s422_s20 = int_to_ptr.hbm [resolvable:$true] %s57_s20  ;;  %s424_s21 = int_to_ptr.hbm [resolvable:$true] %s72_s21 }
  0x1b   : > { %vm83_vm0 = vcmp.le.s32.totalorder %v82_v3, %v81_v5  ;;  %vm86_vm1 = vcmp.lt.s32.totalorder %v81_v5, %v85_v4  ;;  %s225_s22 = sshra.s32 %s422_s20, 4  ;;  %s226_s22 = int_to_ptr.hbm [resolvable:$true] %s225_s22 }
  0x1c   : > { %s227_s2 = scalar_lea.hbm %s226_s22, 8  ;;  %p230_p5 = scmp.lt.s32.totalorder %s226_s22, %s516_s4 }
  0x1d   : > { %p427_p4 = scmp.ne.s32.totalorder %s226_s22, %s227_s2  ;;  %p231_p6 = scmp.lt.s32.totalorder %s229_s25, %s227_s2 }
  0x1f   : > { %p437_p7 = por %p231_p6, %p230_p5 }
  0x21   : > { %p233_p8 = pnand %p437_p7, %p427_p4 }
  0x23   : > { %236 = shalt.err (!%p233_p8)  }
  0x24   : > { %62 = dma.hbm_to_vmem [thread:$0]  %s422_s20, 128, %s60_s8, [#allocation4]  ;;  %vm453_vm2 = vmand %vm83_vm0, %vm86_vm1 }
  0x25   : > { %s249_s30 = sshra.s32 %s424_s21, 4  ;;  %s253_s11 = scalar_lea.hbm %s517_s5, 32  ;;  %s250_s30 = int_to_ptr.hbm [resolvable:$true] %s249_s30 }
  0x26   : > { %s251_s6 = scalar_lea.hbm %s250_s30, 8  ;;  %p254_p10 = scmp.lt.s32.totalorder %s250_s30, %s517_s5 }
  0x27   : > { %p458_p9 = scmp.ne.s32.totalorder %s250_s30, %s251_s6  ;;  %p255_p11 = scmp.lt.s32.totalorder %s253_s11, %s251_s6 }
  0x29   : > { %p468_p12 = por %p255_p11, %p254_p10 }
  0x2b   : > { %p257_p13 = pnand %p468_p12, %p458_p9 }
  0x2d   : > { %260 = shalt.err (!%p257_p13)  }
  0x2e   : > { %77 = dma.hbm_to_vmem [thread:$0]  %s424_s21, 128, %s75_s12, [#allocation4 + $0x1] }
  0x2f   : > { %335 = dma.done.wait [#allocation4], 128 }
  0x30   : > { %336 = vsyncadd [#allocation4], 4294967168  ;;  %vm95_vm3 = vcmask 130048   ;;  %v91_v7 = vld [vmem:[#allocation2] sm:$0xff] }
  0x31   : > { %v94_v8 = vsel %vm453_vm2, 0.0, %v91_v7 }
  0x32   : > { %96 = vst.msk [vmem:[#allocation2] sm:$0xff] %vm95_vm3, %v94_v8 }
  0x33   : > { %296 = shalt.err (!%p233_p8)  }
  0x34   : > { %109 = dma.vmem_to_hbm [thread:$0]  %s60_s8, 128, %s422_s20, [#allocation4] }
  0x35   : > { %337 = dma.done.wait [#allocation4 + $0x1], 128 }
  0x36   : > { %338 = vsyncadd [#allocation4 + $0x1], 4294967168  ;;  %v112_v9 = vld [vmem:[#allocation3] sm:$0xff] }
  0x37   : > { %v113_v10 = vsel %vm453_vm2, 0.0, %v112_v9 }
  0x38   : > { %114 = vst.msk [vmem:[#allocation3] sm:$0xff] %vm95_vm3, %v113_v10 }
  0x39   : > { %320 = shalt.err (!%p257_p13)  }
  0x3a   : > { %127 = dma.vmem_to_hbm [thread:$0]  %s75_s12, 128, %s424_s21, [#allocation4 + $0x1] }
  0x3b   : > { %339 = dma.done.wait [#allocation4], 128 }
  0x3c   : > { %340 = vsyncadd [#allocation4], 4294967168 }
  0x3d   : > { %341 = dma.done.wait [#allocation4 + $0x1], 128 }
  0x3e   : > { %342 = vsyncadd [#allocation4 + $0x1], 4294967168  ;;  %s29_s26 = sadd.s32 1, %s353_s26   ;;  %s525_s24 = smov %s528_s0 }
  0x3f   : > { %p26_p0 = scmp.ge.s32.totalorder %s29_s26, 4   ;;  %s526_s25 = smov %s532_s1 }
  0x41   :  { %28 = sbr.rel (!%p26_p0) target bundleno = 9 (0x9), region = 39 }
  0x46   :  { %132 = vsyncmov [#allocation4] }
  0x49   :  { %s133_s8 = vpop.sfrf %132 }
  0x4a   :  { %p169_p1 = scmp.ne.s32.totalorder %s133_s8, 0 }
  0x4c   :  { %137 = shalt.err (%p169_p1)  }
  0x4d   :  { %139 = vsyncmov [#allocation4 + $0x1] }
  0x50   :  { %s140_s12 = vpop.sfrf %139 }
  0x51   :  { %p170_p2 = scmp.ne.s32.totalorder %s140_s12, 0 }
  0x53   :  { %144 = shalt.err (%p170_p2)  }

</bundles_post_ra>
